<compile_context>
chip_gen: v5e
topology: v5e:2x2
jax: 0.10.0
libtpu: 0.0.40
codegen_flags: <defaults>
</compile_context>

<pallas_src>
import functools

import jax
import jax.numpy as jnp
from jax.experimental import pallas as pl
from jax.experimental.pallas import tpu as pltpu


def _attention_kernel(x_ref, wt_ref, b_ref, u_ref, o_ref, *, tanh_dtype):
    # x_ref : (B_blk*S, d)  input rows (caller dtype; cast to w_t dtype for MXU)
    # wt_ref: (d, Hp)       W^T, hidden dim zero-padded to a multiple of 128
    # b_ref : (1, Hp)       bias  (f32, zero-padded)
    # u_ref : (1, Hp)       u row (f32, zero-padded)
    # o_ref : (B_blk, S)    softmax-over-S attention weights (f32)
    b_blk, seq = o_ref.shape
    hp = wt_ref.shape[1]

    # MXU matmul for the whole block: (B_blk*S, d) @ (d, Hp), f32 accumulate.
    # Cast to the weight dtype in VMEM (free-ish VPU) instead of in the
    # wrapper, so x is never re-written to HBM just to change dtype.
    x_blk = x_ref[...].astype(wt_ref.dtype)
    h = jnp.dot(x_blk, wt_ref[...], preferred_element_type=jnp.float32)
    h = h + b_ref[...]                                   # (B_blk*S, Hp) f32

    # tanh on the EUP; bf16 on v6e/v7x (bf16 EUP), f32 on v5e.
    # Padded hidden columns are tanh(0) = 0.
    th = jnp.tanh(h.astype(tanh_dtype))                  # in [-1, 1]

    # Second projection has N=1: VPU multiply + XLU lane reduction instead of a
    # degenerate MXU matmul.  Padded u entries are 0 -> no contribution.
    # (bf16 * f32 promotes to f32, so the reduction accumulates in f32.)
    hu = (th * u_ref[...]).reshape(b_blk, seq, hp)
    scores = jnp.sum(hu, axis=-1)                        # (B_blk, S), S on lanes

    # Numerically stable softmax over the sequence axis; exact normalisation.
    m = jnp.max(scores, axis=-1, keepdims=True)          # (B_blk, 1)
    e = jnp.exp(scores - m)                              # (B_blk, S)
    o_ref[...] = e / jnp.sum(e, axis=-1, keepdims=True)


@functools.partial(jax.jit, static_argnames=("compute_dtype", "tanh_dtype"))
def _attention_forward(x, w, b, u, *, compute_dtype, tanh_dtype):
    B, S, d = x.shape
    H = w.shape[0]
    Hp = pl.cdiv(H, 128) * 128

    # Tiny weight tensors: pad hidden dim to a full 128-lane width (numerically
    # free: tanh(0)=0 and padded u entries are 0) and lay W out as (d, Hp).
    w_t = jnp.pad(w, ((0, Hp - H), (0, 0))).T.astype(compute_dtype)       # (d, Hp)
    b2 = jnp.pad(b, (0, Hp - H)).reshape(1, Hp).astype(jnp.float32)       # (1, Hp)
    u2 = jnp.pad(u.reshape(-1), (0, Hp - H)).reshape(1, Hp).astype(jnp.float32)

    # Flatten (B, S, d) -> (B*S, d): free under row-major layout.  x keeps its
    # own dtype (no wrapper-side cast => no extra HBM pass).
    x2 = x.reshape(B * S, d)

    # ---- Per-generation block sizing --------------------------------------
    kind = jax.devices()[0].device_kind.lower()
    if "v7" in kind:                        # 64 MiB VMEM / TC, 2 TCs, 3.2 TB/s
        work_budget, vmem_limit = 28 << 20, 48 << 20
    elif "v5" in kind or "v6" in kind:      # 128 MiB VMEM
        work_budget, vmem_limit = 64 << 20, 100 << 20
    else:                                   # unknown chip: stay near defaults
        work_budget, vmem_limit = 14 << 20, 32 << 20

    # Conservative per-row VMEM estimate: double-buffered x tile + the
    # (rows, Hp) matmul / tanh / h*u intermediates + double-buffered output.
    x_bytes = jnp.dtype(x.dtype).itemsize
    t_bytes = jnp.dtype(tanh_dtype).itemsize
    bytes_per_row = 2 * d * x_bytes + Hp * (8 + t_bytes) + 64
    rows = int(min(max(work_budget // bytes_per_row, 8), 32768))

    b_blk_cap = max(1, rows // S)
    if b_blk_cap >= B:
        b_blk = B
        # Keep >= 2 grid steps when it is free so ("parallel",) can shard
        # batch blocks across the two v7x TensorCores.
        if B >= 16 and B % 16 == 0:
            b_blk = B // 2
    else:
        # Multiple of 8 so the (B_blk, S) output tile satisfies the sublane
        # constraint; a ragged batch tail is handled by Pallas edge masking.
        b_blk = max(8, (b_blk_cap // 8) * 8)
    grid = (pl.cdiv(B, b_blk),)
    # TODO(synk): if a single (S, d) sequence ever exceeds the VMEM budget,
    # add an S-tiled grid axis with an online-softmax carry.
    # TODO(synk): the module's explicit-mask branch (mask*scores + (1-mask)*
    # mask_value) is not implemented; mask=None (all-ones, a no-op) is assumed.

    kernel = functools.partial(_attention_kernel, tanh_dtype=tanh_dtype)
    out = pl.pallas_call(
        kernel,
        out_shape=jax.ShapeDtypeStruct((B, S), jnp.float32),
        grid=grid,
        in_specs=[
            pl.BlockSpec((b_blk * S, d), lambda i: (i, 0)),   # x rows (streamed)
            pl.BlockSpec((d, Hp), lambda i: (0, 0)),          # W^T   (resident)
            pl.BlockSpec((1, Hp), lambda i: (0, 0)),          # bias  (resident)
            pl.BlockSpec((1, Hp), lambda i: (0, 0)),          # u     (resident)
        ],
        out_specs=pl.BlockSpec((b_blk, S), lambda i: (i, 0)),
        compiler_params=pltpu.CompilerParams(
            dimension_semantics=("parallel",),
            vmem_limit_bytes=vmem_limit,
        ),
    )(x2, w_t, b2, u2)

    # Module output shape (B, S, 1); reshape is free.
    return out.reshape(B, S, 1)


def attention_forward(x, w, b, u, *, compute_dtype=None, tanh_dtype=None):
    """x: (B, S, d); w: (H, d); b: (H,); u: (1, H)  ->  (B, S, 1) float32."""
    kind = jax.devices()[0].device_kind.lower()
    if compute_dtype is None:
        # bf16 MXU inputs are fine on every generation (f32 accumulate).
        compute_dtype = jnp.bfloat16
    if tanh_dtype is None:
        # bf16 EUP only on v6e / v7x; keep f32 tanh on v5e / unknown chips.
        tanh_dtype = jnp.bfloat16 if ("v6" in kind or "v7" in kind) else jnp.float32
    return _attention_forward(x, w, b, u,
                              compute_dtype=compute_dtype, tanh_dtype=tanh_dtype)


def _xavier_uniform(key, shape):
    fan_out, fan_in = shape
    bound = (6.0 / (fan_in + fan_out)) ** 0.5
    return jax.random.uniform(key, shape, jnp.float32, -bound, bound)


def _reference(x, w, b, u):
    # Pure-JAX reference mirroring the PyTorch forward (mask=None path).
    scores = jnp.tanh(jnp.einsum("bsd,hd->bsh", x, w) + b) @ u.T    # (B, S, 1)
    return jax.nn.softmax(scores, axis=-2)


if __name__ == "__main__":
    # Small shapes consistent with the module: (batch, seq, d), hid_dim.
    B, S, d, hid_dim = 2, 8, 32, 16

    key = jax.random.PRNGKey(0)
    kx, kw, ku = jax.random.split(key, 3)

    x = jax.random.normal(kx, (B, S, d), jnp.float32)
    W_weight = _xavier_uniform(kw, (hid_dim, d))     # nn.Linear(d, hid).weight
    W_bias = jnp.zeros((hid_dim,), jnp.float32)      # zeros_ init
    u_weight = _xavier_uniform(ku, (1, hid_dim))     # nn.Linear(hid, 1, bias=False).weight

    ref = _reference(x, W_weight, W_bias, u_weight)

    # Default path: bf16 MXU inputs (all generations), bf16 tanh on v6e/v7x.
    out = jax.block_until_ready(attention_forward(x, W_weight, W_bias, u_weight))
    assert out.shape == (B, S, 1)
    assert jnp.allclose(out, ref, atol=5e-2, rtol=5e-2), "default path mismatch"
    assert jnp.allclose(jnp.sum(out, axis=-2), 1.0, atol=1e-3), "rows must sum to 1"

    # Full float32 path (tight check).
    out32 = jax.block_until_ready(
        attention_forward(x, W_weight, W_bias, u_weight,
                          compute_dtype=jnp.float32, tanh_dtype=jnp.float32))
    assert jnp.allclose(out32, ref, atol=1e-4, rtol=1e-4), "f32 path mismatch"

    # Callers that already hold activations in bf16 get the halved HBM read.
    out_bf = jax.block_until_ready(
        attention_forward(x.astype(jnp.bfloat16), W_weight, W_bias, u_weight))
    assert jnp.allclose(out_bf, ref, atol=5e-2, rtol=5e-2), "bf16-x path mismatch"

    print("KERNEL_OK")
</pallas_src>

<mosaic_0001>
module attributes {stable_mosaic.version = 11 : i64} {
  func.func @_attention_kernel(%arg0: i32, %arg1: memref<16x32xf32, #tpu.memory_space<vmem>>, %arg2: memref<32x128xbf16, #tpu.memory_space<vmem>>, %arg3: memref<1x128xf32, #tpu.memory_space<vmem>>, %arg4: memref<1x128xf32, #tpu.memory_space<vmem>>, %arg5: memref<2x8xf32, #tpu.memory_space<vmem>>) attributes {dimension_semantics = [#tpu.dimension_semantics<parallel>], iteration_bounds = array<i64: 1>, scalar_prefetch = 0 : i64, scratch_operands = 0 : i64, tpu.core_type = #tpu.core_type<tc>, window_params = [{transform_indices = @transform_0, window_bounds = array<i64: 16, 32>}, {pipeline_mode = #tpu.pipeline_mode<synchronous>, transform_indices = @transform_1, window_bounds = array<i64: 32, 128>}, {pipeline_mode = #tpu.pipeline_mode<synchronous>, transform_indices = @transform_2, window_bounds = array<i64: 1, 128>}, {pipeline_mode = #tpu.pipeline_mode<synchronous>, transform_indices = @transform_3, window_bounds = array<i64: 1, 128>}, {transform_indices = @transform_4, window_bounds = array<i64: 2, 8>}]} {
    %c0 = arith.constant 0 : index
    %c0_0 = arith.constant 0 : index
    %0 = vector.load %arg1[%c0, %c0_0] : memref<16x32xf32, #tpu.memory_space<vmem>>, vector<16x32xf32>
    %1 = arith.truncf %0 : vector<16x32xf32> to vector<16x32xbf16>
    %c0_1 = arith.constant 0 : index
    %c0_2 = arith.constant 0 : index
    %2 = vector.load %arg2[%c0_1, %c0_2] : memref<32x128xbf16, #tpu.memory_space<vmem>>, vector<32x128xbf16>
    %cst = arith.constant dense<0.000000e+00> : vector<16x128xf32>
    %3 = tpu.matmul %1, %2, %cst {dimension_numbers = #tpu.dot_dimension_numbers<[1], [0], [0], [1], [0, 0, 1, 1], [], []>} : vector<16x32xbf16>, vector<32x128xbf16>, vector<16x128xf32> -> vector<16x128xf32>
    %c0_3 = arith.constant 0 : index
    %c0_4 = arith.constant 0 : index
    %4 = vector.load %arg3[%c0_3, %c0_4] : memref<1x128xf32, #tpu.memory_space<vmem>>, vector<1x128xf32>
    %5 = vector.broadcast %4 : vector<1x128xf32> to vector<16x128xf32>
    %6 = arith.addf %3, %5 : vector<16x128xf32>
    %7 = math.tanh %6 : vector<16x128xf32>
    %c0_5 = arith.constant 0 : index
    %c0_6 = arith.constant 0 : index
    %8 = vector.load %arg4[%c0_5, %c0_6] : memref<1x128xf32, #tpu.memory_space<vmem>>, vector<1x128xf32>
    %9 = vector.broadcast %8 : vector<1x128xf32> to vector<16x128xf32>
    %10 = arith.mulf %7, %9 : vector<16x128xf32>
    %11 = vector.shape_cast %10 : vector<16x128xf32> to vector<2x8x128xf32>
    %cst_7 = arith.constant dense<0.000000e+00> : vector<2x8xf32>
    %12 = vector.multi_reduction <add>, %11, %cst_7 [2] : vector<2x8x128xf32> to vector<2x8xf32>
    %cst_8 = arith.constant dense<0xFF800000> : vector<2xf32>
    %13 = vector.multi_reduction <maximumf>, %12, %cst_8 [1] : vector<2x8xf32> to vector<2xf32>
    %14 = vector.shape_cast %13 : vector<2xf32> to vector<2x1xf32>
    %15 = vector.broadcast %14 : vector<2x1xf32> to vector<2x8xf32>
    %16 = arith.subf %12, %15 : vector<2x8xf32>
    %17 = math.exp %16 : vector<2x8xf32>
    %cst_9 = arith.constant dense<0.000000e+00> : vector<2xf32>
    %18 = vector.multi_reduction <add>, %17, %cst_9 [1] : vector<2x8xf32> to vector<2xf32>
    %19 = vector.shape_cast %18 : vector<2xf32> to vector<2x1xf32>
    %20 = vector.broadcast %19 : vector<2x1xf32> to vector<2x8xf32>
    %21 = arith.divf %17, %20 : vector<2x8xf32>
    %c0_10 = arith.constant 0 : index
    %c0_11 = arith.constant 0 : index
    %22 = vector.load %arg5[%c0_10, %c0_11] : memref<2x8xf32, #tpu.memory_space<vmem>>, vector<2x8xf32>
    tpu.vector_store %arg5[%c0_10, %c0_11], %21 {strides = array<i32>} : memref<2x8xf32, #tpu.memory_space<vmem>>, vector<2x8xf32>,
    return
  }
  func.func @transform_0(%arg0: i32) -> (i32, i32) {
    %c0_i32 = arith.constant 0 : i32
    %c0_i32_0 = arith.constant 0 : i32
    return %arg0, %c0_i32 : i32, i32
  }
  func.func @transform_1(%arg0: i32) -> (i32, i32) {
    %c0_i32 = arith.constant 0 : i32
    %c0_i32_0 = arith.constant 0 : i32
    %c0_i32_1 = arith.constant 0 : i32
    return %c0_i32, %c0_i32_0 : i32, i32
  }
  func.func @transform_2(%arg0: i32) -> (i32, i32) {
    %c0_i32 = arith.constant 0 : i32
    %c0_i32_0 = arith.constant 0 : i32
    %c0_i32_1 = arith.constant 0 : i32
    return %c0_i32, %c0_i32_0 : i32, i32
  }
  func.func @transform_3(%arg0: i32) -> (i32, i32) {
    %c0_i32 = arith.constant 0 : i32
    %c0_i32_0 = arith.constant 0 : i32
    %c0_i32_1 = arith.constant 0 : i32
    return %c0_i32, %c0_i32_0 : i32, i32
  }
  func.func @transform_4(%arg0: i32) -> (i32, i32) {
    %c0_i32 = arith.constant 0 : i32
    %c0_i32_0 = arith.constant 0 : i32
    return %arg0, %c0_i32 : i32, i32
  }
}

</mosaic_0001>

<bundles_post_ra>
// kernel: _attention_forward.1
= control target key start
LH: loop header
LB: loop body
LE: loop exit
PB: predicated region body
PF: predicated region fallthrough
CT: control target
= control target key end

     0   :  { %s293_s0 = inlined_call_operand.vmem [shape: f32[16,32], index: 0, kind: input, shape index: {}]   ;;  %s294_s1 = inlined_call_operand.vmem [shape: bf16[32,128], index: 1, kind: input, shape index: {}]   ;;  %s295_s2 = inlined_call_operand.vmem [shape: f32[1,128], index: 2, kind: input, shape index: {}]   ;;  %s296_s3 = inlined_call_operand.vmem [shape: f32[1,128], index: 3, kind: input, shape index: {}]   ;;  %s297_s4 = inlined_call_operand.hbm [shape: f32[2,8], index: 4, kind: output, shape index: {}]  }
   0x1   :  { %v185_v0 = vld [vmem:[%s294_s1 + $0x8] sm:$0xff]  ;;  %v184_v1 = vld [vmem:[%s294_s1] sm:$0xff] }
   0x2   :  { %v19_v2 = vld [vmem:[%s293_s0] sm:$0xff]  ;;  %52 = vmatpush.bf16.msra.mxu0 %v185_v0  ;;  %v20_v3 = vld [vmem:[%s293_s0 + $0x8] sm:$0xff] }
   0x3   :  { %9 = vsyncpa [#allocation3], 0  ;;  %v21_v4 = vpack.c.bf16 %v20_v3, %v19_v2  ;;  %vm42_vm0 = vcmask 261120   ;;  %v191_v5 = vld [vmem:[%s295_s2] ss:$0 sm:$0xff]  ;;  %v74_v16 = vlaneseq  ;;  %vm78_vm1 = vcmask 1041409  }
   0x4   :  { %v192_v8 = vld [vmem:[%s296_s3] ss:$0 sm:$0xff]  ;;  %vm81_vm2 = vcmask 58368   ;;  %v231_v23 = vmov 0   ;;  %s232_s0 = smov [#allocation2]   ;;  %s166_s27 = sshll.u32 %s297_s4, 4  ;;  %s167_s27 = int_to_ptr.hbm [resolvable:$true] %s166_s27 }
   0x5   :  { %v276_v17 = vand.u32 127, %v74_v16  ;;  %189 = vset.pattern.permute.xlu2 %v231_v23  ;;  %188 = vset.pattern.permute.xlu1 %v231_v23  ;;  %s164_s2 = sshll.u32 %s232_s0, 4  ;;  %s165_s2 = int_to_ptr.vmem [resolvable:$true] %s164_s2 }
   0x6   :  { %53 = vmatpush.bf16.msra.mxu0 %v184_v1  ;;  %190 = vset.pattern.permute.xlu0 %v231_v23 }
   0x9   :  { %183 = vmatmul.msk.bf16.vlgmr.msra.gmra.mxu0 %vm42_vm0, %v21_v4 }
  0x86   :  { %v55_v6 = vpop.f32.mrf.mxu0 }
  0x87   :  { %v56_v7 = vadd.f32 %v191_v5, %v55_v6 }
  0x89   :  { %193 = vtanh.f32 %v56_v7 }
  0x8e   :  { %v57_v9 = vpop.f32.mrf.mxu0 }
  0x8f   :  { %v194_v10 = vpop.eup %193  ;;  %v58_v11 = vadd.f32 %v191_v5, %v57_v9 }
  0x90   :  { %v66_v12 = vmul.f32 %v194_v10, %v192_v8 }
  0x91   :  { %195 = vtanh.f32 %v58_v11 }
  0x92   :  { %68 = vadd.xlane.f32.xlu0 %v66_v12 }
  0x97   :  { %v196_v13 = vpop.eup %195 }
  0x98   :  { %v67_v14 = vmul.f32 %v196_v13, %v192_v8 }
  0x9a   :  { %70 = vadd.xlane.f32.xlu0 %v67_v14 }
 0x105   :  { %v69_v15 = vpop.xlane.xlu0 %68 }
 0x106   :  { %v76_v19 = vperm.slane %v69_v15, %v276_v17 }
 0x10d   :  { %v71_v18 = vpop.xlane.xlu0 %70 }
 0x10e   :  { %v77_v20 = vperm.slane %v71_v18, %v276_v17 }
 0x110   :  { %v79_v21 = vsel %vm78_vm1, %v77_v20, %v76_v19 }
 0x111   :  { %v82_v22 = vsel %vm81_vm2, %v79_v21, -inf }
 0x112   :  { %83 = vmax.xlane.f32.xlu1 %v82_v22 }
 0x185   :  { %v84_v24 = vpop.xlane.xlu1 %83 }
 0x186   :  { %v86_v25 = vperm.slane %v84_v24, 0  ;;  %v87_v26 = vperm.slane %v84_v24, 1 }
 0x188   :  { %v90_v27 = vsub.f32 %v69_v15, %v86_v25  ;;  %v91_v28 = vsub.f32 %v71_v18, %v87_v26 }
 0x18a   :  { %v92_v29 = vmul.f32 1.442695, %v90_v27  ;;  %v94_v30 = vmul.f32 1.442695, %v91_v28 }
 0x18c   :  { %197 = vpow2.f32 %v92_v29 }
 0x18d   :  { %199 = vpow2.f32 %v94_v30 }
 0x192   :  { %v198_v31 = vpop.eup %197 }
 0x193   :  { %v200_v32 = vpop.eup %199  ;;  %99 = vperm.xlu1 %188, %v198_v31  }
 0x194   :  { %102 = vperm.xlu2 %189, %v200_v32  }
 0x1ee   :  { %v103_v33 = vpop.permute.xlu2 %102 }
 0x1ef   :  { %v105_v35 = vperm.slane %v103_v33, %v276_v17 }
 0x205   :  { %v100_v34 = vpop.permute.xlu1 %99 }
 0x206   :  { %v104_v36 = vperm.slane %v100_v34, %v276_v17 }
 0x208   :  { %v106_v37 = vsel %vm78_vm1, %v105_v35, %v104_v36 }
 0x209   :  { %v108_v38 = vsel %vm81_vm2, %v106_v37, 0.0 }
 0x20a   :  { %109 = vadd.xlane.f32.xlu2 %v108_v38 }
 0x27d   :  { %v110_v39 = vpop.xlane.xlu2 %109 }
 0x27e   :  { %v112_v40 = vperm.slane %v110_v39, 0  ;;  %v113_v41 = vperm.slane %v110_v39, 1 }
 0x280   :  { %201 = vrcp.f32 %v112_v40  ;;  %v127_v48 = vand.u32 2147483648, %v112_v40  ;;  %v142_v49 = vand.u32 2147483648, %v113_v41  ;;  %v125_v51 = vand.u32 2147483647, %v112_v40 }
 0x281   :  { %203 = vrcp.f32 %v113_v41  ;;  %v140_v53 = vand.u32 2147483647, %v113_v41  ;;  %vm121_vm5 = vweird.f32 %v112_v40  ;;  %vm136_vm6 = vweird.f32 %v113_v41 }
 0x282   :  { %v128_v56 = vor.u32 1.1754944e-38, %v127_v48  ;;  %v143_v57 = vor.u32 1.1754944e-38, %v142_v49  ;;  %vm126_vm9 = vcmp.eq.f32.partialorder %v125_v51, 8.507059e+37 }
 0x283   :  { %vm141_vm10 = vcmp.eq.f32.partialorder %v140_v53, 8.507059e+37 }
 0x286   :  { %v202_v42 = vpop.eup %201 }
 0x287   :  { %v204_v43 = vpop.eup %203  ;;  %v117_v44 = vmul.f32 %v202_v42, %v112_v40  ;;  %vm122_vm3 = vweird.f32 %v202_v42 }
 0x288   :  { %v132_v45 = vmul.f32 %v204_v43, %v113_v41  ;;  %vm137_vm4 = vweird.f32 %v204_v43  ;;  %vm123_vm7 = vmor %vm121_vm5, %vm122_vm3 }
 0x289   :  { %v118_v46 = vsub.f32 1.0, %v117_v44  ;;  %vm138_vm8 = vmor %vm136_vm6, %vm137_vm4 }
 0x28a   :  { %v133_v47 = vsub.f32 1.0, %v132_v45 }
 0x28b   :  { %v119_v50 = vmul.f32 %v202_v42, %v118_v46 }
 0x28c   :  { %v134_v52 = vmul.f32 %v204_v43, %v133_v47 }
 0x28d   :  { %v120_v54 = vadd.f32 %v202_v42, %v119_v50 }
 0x28e   :  { %v135_v55 = vadd.f32 %v204_v43, %v134_v52 }
 0x28f   :  { %v124_v58 = vsel %vm123_vm7, %v202_v42, %v120_v54 }
 0x290   :  { %v139_v59 = vsel %vm138_vm8, %v204_v43, %v135_v55  ;;  %v129_v60 = vsel %vm126_vm9, %v128_v56, %v124_v58 }
 0x291   :  { %v144_v61 = vsel %vm141_vm10, %v143_v57, %v139_v59  ;;  %v130_v62 = vmul.f32 %v198_v31, %v129_v60 }
 0x292   :  { %v145_v63 = vmul.f32 %v200_v32, %v144_v61 }
 0x293   :  { %149 = vperm.xlu0 %190, %v130_v62  }
 0x294   :  { %152 = vperm.xlu1 %188, %v145_v63  }
 0x305   :  { %v150_v0 = vpop.permute.xlu0 %149 }
 0x306   :  { %v153_v1 = vpop.permute.xlu1 %152  ;;  %v154_v2 = vperm.slane %v150_v0, %v276_v17 }
 0x307   :  { %v155_v3 = vperm.slane %v153_v1, %v276_v17 }
 0x309   :  { %v156_v4 = vsel %vm78_vm1, %v155_v3, %v154_v2 }
 0x30a   :  { %158 = vst.msk [vmem:[#allocation2] sm:$0x3] %vm81_vm2, %v156_v4 }
 0x30b   :  { %169 = dma.vmem_to_hbm [thread:$0]  %s165_s2, 32, %s167_s27, [#allocation3]  }
 0x30c   :  { %229 = dma.done.wait [#allocation3], 32  }
 0x30d   :  { %230 = vsyncadd [#allocation3], 4294967264 }
 0x30e   :  { %174 = vsyncpa [#allocation3], 1 }

</bundles_post_ra>
